<compile_context>
chip_gen: v5e
topology: v5e:2x2
jax: 0.10.0
libtpu: 0.0.40
codegen_flags: <defaults>
</compile_context>

<pallas_src>
import functools

import jax
import jax.numpy as jnp
from jax import lax
from jax.experimental import pallas as pl
from jax.experimental.pallas import tpu as pltpu


def _round_up(x: int, m: int) -> int:
    return (x + m - 1) // m * m


def _tpu_generation() -> int:
    """Best-effort TPU generation (5 / 6 / 7); unknown -> 6 (safe default)."""
    try:
        kind = jax.devices()[0].device_kind.lower()
    except Exception:
        return 6
    if "v7" in kind or "7x" in kind:
        return 7
    if "v6" in kind:
        return 6
    if any(t in kind for t in ("v5", "v4", "v3", "v2")):
        return 5
    return 6


def _vmem_capacity_bytes(gen: int) -> int:
    try:
        cap = getattr(pltpu.get_tpu_info(), "vmem_capacity_bytes", None)
        if cap:
            return int(cap)
    except Exception:
        pass
    return (64 << 20) if gen >= 7 else (128 << 20)


def _vqa_fusion_kernel(x_ref, w1_ref, b1_ref, w2_ref, b2_ref, w3_ref, b3_ref,
                       out_ref, *, d_img_p: int, bf16_epilogue: bool):
    eps = 1e-12

    # ---- L2-normalize the image / question halves of the pre-concatenated input.
    x = x_ref[...]                                                    # (TB, d_in_p) f32
    xi = x[:, :d_img_p]
    xt = x[:, d_img_p:]
    si = lax.rsqrt(jnp.sum(xi * xi, axis=-1, keepdims=True) + eps)    # EUP rsqrt
    st = lax.rsqrt(jnp.sum(xt * xt, axis=-1, keepdims=True) + eps)
    col = lax.broadcasted_iota(jnp.int32, x.shape, 1)
    x_n = (x * jnp.where(col < d_img_p, si, st)).astype(jnp.bfloat16)

    def _bias_relu(y_f32, b_ref):
        # Dropout(0.5) is identity in eval mode.
        # TODO(synk): training-mode dropout (PRNG mask) not implemented.
        if bf16_epilogue:  # v6e/v7x bf16 VALU: halves vreg/VMEM pressure of h1/h2
            y = y_f32.astype(jnp.bfloat16) + b_ref[...].astype(jnp.bfloat16)
            return jnp.maximum(y, 0.0)
        return jnp.maximum(y_f32 + b_ref[...], 0.0).astype(jnp.bfloat16)

    # Single dot per layer; bf16 MXU operands, f32 accumulation.
    h1 = _bias_relu(jnp.dot(x_n, w1_ref[...], preferred_element_type=jnp.float32),
                    b1_ref)
    h2 = _bias_relu(jnp.dot(h1, w2_ref[...], preferred_element_type=jnp.float32),
                    b2_ref)
    out = jnp.dot(h2, w3_ref[...], preferred_element_type=jnp.float32) + b3_ref[...]
    out_ref[...] = out.astype(out_ref.dtype)


def prepare_params(params, d_img: int, d_txt: int):
    """One-time weight prep: 128-lane zero padding + bf16 cast (hoisted out of forward)."""
    H = params["w2"].shape[0]
    A = params["w3"].shape[1]
    d_img_p, d_txt_p = _round_up(d_img, 128), _round_up(d_txt, 128)
    H_p, A_p = _round_up(H, 128), _round_up(A, 128)
    d_in_p = d_img_p + d_txt_p

    def pad_w(w, rows, cols):
        w = jnp.asarray(w, jnp.float32)
        return jnp.pad(w, ((0, rows - w.shape[0]), (0, cols - w.shape[1])))

    def pad_b(b, cols):
        b = jnp.asarray(b, jnp.float32).reshape(1, -1)
        return jnp.pad(b, ((0, 0), (0, cols - b.shape[1])))

    # W1 stays a single matrix; its image / question row blocks are placed at the
    # 128-aligned offsets matching the pre-concatenated [img | txt] input.
    w1 = jnp.asarray(params["w1"], jnp.float32)
    w1_full = jnp.zeros((d_in_p, H_p), jnp.float32)
    w1_full = w1_full.at[:d_img, :H].set(w1[:d_img])
    w1_full = w1_full.at[d_img_p:d_img_p + d_txt, :H].set(w1[d_img:])

    # TODO(synk): optional fp8 quantization of w2/w3 for the v7x fp8 MXU (flagged).
    return {
        "w1": w1_full.astype(jnp.bfloat16),
        "b1": pad_b(params["b1"], H_p),
        "w2": pad_w(params["w2"], H_p, H_p).astype(jnp.bfloat16),
        "b2": pad_b(params["b2"], H_p),
        "w3": pad_w(params["w3"], H_p, A_p).astype(jnp.bfloat16),
        "b3": pad_b(params["b3"], A_p),
        "dims": dict(d_img=d_img, d_txt=d_txt, d_img_p=d_img_p, d_txt_p=d_txt_p,
                     d_in_p=d_in_p, H=H, H_p=H_p, A=A, A_p=A_p),
    }


def _choose_tile_and_vmem(B, d_in_p, H_p, A_p, weight_bytes, out_itemsize,
                          act_itemsize, gen, vmem_cap, batch_tile):
    budget = int(vmem_cap * 0.7)

    def need(tb):
        return (weight_bytes                      # weights/biases (single-buffered, resident)
                + 2 * tb * d_in_p * 4             # input tile (f32, double-buffered)
                + 2 * tb * A_p * out_itemsize     # output tile (double-buffered)
                + tb * d_in_p * 2                 # bf16 normalized-input temporary
                + 2 * tb * H_p * act_itemsize)    # h1 / h2 temporaries

    tb = 16
    for cand in (1024, 768, 512, 384, 256, 192, 128, 96, 64, 48, 32, 16):
        if cand <= batch_tile and need(cand) <= budget:
            tb = cand
            break
    tb = min(tb, max(16, _round_up(B, 16)))       # no larger than the (16-aligned) batch
    # v7x has 2 TensorCores: ensure >= 2 "parallel" grid steps when the batch allows.
    if gen >= 7 and B >= 32 and _round_up(B, tb) // tb < 2:
        tb = max(16, _round_up(pl.cdiv(B, 2), 16))
    vmem_limit = min(int(vmem_cap * 0.75), max(32 << 20, need(tb) * 3 // 2))
    return tb, vmem_limit


def vqa_model_forward(image_feats, question_feats, prepared, *,
                      batch_tile=None, out_dtype=jnp.float32, bf16_epilogue=None):
    """Pallas forward of VQAModel: L2-norm, concat, Linear-ReLU-Drop x2, Linear."""
    dims = prepared["dims"]
    d_img, d_txt = dims["d_img"], dims["d_txt"]
    d_img_p, d_txt_p, d_in_p = dims["d_img_p"], dims["d_txt_p"], dims["d_in_p"]
    H_p, A_p, A = dims["H_p"], dims["A_p"], dims["A"]

    gen = _tpu_generation()
    vmem_cap = _vmem_capacity_bytes(gen)
    if bf16_epilogue is None:
        bf16_epilogue = gen >= 6          # v5e has no bf16 VPU -> keep f32 epilogue there
    if batch_tile is None:
        batch_tile = 512 if gen >= 7 else 1024   # 64 MiB VMEM (v7x) vs 128 MiB (v5e/v6e)

    B = image_feats.shape[0]
    out_itemsize = jnp.dtype(out_dtype).itemsize
    act_itemsize = 2 if bf16_epilogue else 4
    weight_bytes = ((d_in_p * H_p + H_p * H_p + H_p * A_p) * 2
                    + (2 * H_p + A_p) * 4)
    TB, vmem_limit = _choose_tile_and_vmem(B, d_in_p, H_p, A_p, weight_bytes,
                                           out_itemsize, act_itemsize, gen,
                                           vmem_cap, batch_tile)
    B_p = _round_up(B, TB)
    n_b = B_p // TB

    # Per-call feature layout only: pad to lane-dense tiles + pre-concat so layer 1
    # is a single dot. (Weights were padded/cast once in prepare_params.)
    img = jnp.pad(image_feats.astype(jnp.float32),
                  ((0, B_p - B), (0, d_img_p - d_img)))
    txt = jnp.pad(question_feats.astype(jnp.float32),
                  ((0, B_p - B), (0, d_txt_p - d_txt)))
    x = jnp.concatenate([img, txt], axis=1)

    kernel = functools.partial(_vqa_fusion_kernel, d_img_p=d_img_p,
                               bf16_epilogue=bf16_epilogue)

    flops = 2 * B_p * (d_in_p * H_p + H_p * H_p + H_p * A_p)
    bytes_accessed = x.size * 4 + weight_bytes + B_p * A_p * out_itemsize
    cost = pl.CostEstimate(flops=flops, transcendentals=2 * B_p,
                           bytes_accessed=bytes_accessed)

    def _run(single_buffer_weights):
        if single_buffer_weights:
            # Constant-index blocks are DMA'd once; Buffered(1) drops the unused
            # second VMEM buffer (halves the resident-weight footprint, key on v7x).
            def wspec(shape):
                return pl.BlockSpec(shape, lambda i: (0, 0),
                                    pipeline_mode=pl.Buffered(1))
        else:
            def wspec(shape):
                return pl.BlockSpec(shape, lambda i: (0, 0))

        grid_spec = pltpu.PrefetchScalarGridSpec(
            num_scalar_prefetch=0,
            grid=(n_b,),
            in_specs=[
                pl.BlockSpec((TB, d_in_p), lambda i: (i, 0)),   # streamed activations
                wspec((d_in_p, H_p)),
                wspec((1, H_p)),
                wspec((H_p, H_p)),
                wspec((1, H_p)),
                wspec((H_p, A_p)),
                wspec((1, A_p)),
            ],
            out_specs=pl.BlockSpec((TB, A_p), lambda i: (i, 0)),
        )
        return pl.pallas_call(
            kernel,
            out_shape=jax.ShapeDtypeStruct((B_p, A_p), out_dtype),
            grid_spec=grid_spec,
            compiler_params=pltpu.CompilerParams(
                dimension_semantics=("parallel",),
                vmem_limit_bytes=vmem_limit,
            ),
            cost_estimate=cost,
        )(x, prepared["w1"], prepared["b1"], prepared["w2"], prepared["b2"],
          prepared["w3"], prepared["b3"])

    try:
        out_pad = _run(True)
    except Exception:
        # pipeline_mode=pl.Buffered(1) not supported by this jax version -> default buffering.
        out_pad = _run(False)

    return out_pad[:B, :A]


def init_params(key, d_img, d_txt, hidden_dim, num_answers):
    """Deterministic nn.Linear-style init (uniform +/- 1/sqrt(fan_in))."""
    keys = jax.random.split(key, 6)
    d_in = d_img + d_txt

    def lin(kw, kb, fan_in, fan_out):
        bound = 1.0 / jnp.sqrt(fan_in)
        w = jax.random.uniform(kw, (fan_in, fan_out), jnp.float32, -bound, bound)
        b = jax.random.uniform(kb, (1, fan_out), jnp.float32, -bound, bound)
        return w, b

    w1, b1 = lin(keys[0], keys[1], d_in, hidden_dim)
    w2, b2 = lin(keys[2], keys[3], hidden_dim, hidden_dim)
    w3, b3 = lin(keys[4], keys[5], hidden_dim, num_answers)
    return {"w1": w1, "b1": b1, "w2": w2, "b2": b2, "w3": w3, "b3": b3}


def reference_forward(image_feats, question_feats, params):
    """Pure-JAX f32 reference mirroring the PyTorch module semantics (eval mode)."""
    img_n = image_feats / jnp.linalg.norm(image_feats, axis=-1, keepdims=True)
    txt_n = question_feats / jnp.linalg.norm(question_feats, axis=-1, keepdims=True)
    x = jnp.concatenate([img_n, txt_n], axis=1)
    h1 = jnp.maximum(x @ params["w1"] + params["b1"], 0.0)
    h2 = jnp.maximum(h1 @ params["w2"] + params["b2"], 0.0)
    return h2 @ params["w3"] + params["b3"]


if __name__ == "__main__":
    # Small shapes: batch=8, CLIP visual.output_dim=32, text_projection dim=32,
    # hidden_dim=32, num_answers=16 (padded internally to 128-lane / 16-row tiles).
    B, D_IMG, D_TXT, HIDDEN, NUM_ANSWERS = 8, 32, 32, 32, 16

    key = jax.random.PRNGKey(0)
    k_img, k_txt, k_param = jax.random.split(key, 3)

    # Stand-ins for clip_model.encode_image(images).float() / encode_text(questions).float()
    image_feats = jax.random.normal(k_img, (B, D_IMG), jnp.float32)
    question_feats = jax.random.normal(k_txt, (B, D_TXT), jnp.float32)

    params = init_params(k_param, D_IMG, D_TXT, HIDDEN, NUM_ANSWERS)
    prepared = prepare_params(params, D_IMG, D_TXT)       # one-time weight prep (cached)

    out = vqa_model_forward(image_feats, question_feats, prepared)
    out = jax.block_until_ready(out)

    ref = reference_forward(image_feats, question_feats, params)
    assert out.shape == (B, NUM_ANSWERS)
    assert jnp.allclose(out, ref, atol=2e-2, rtol=2e-2), "mismatch vs f32 reference"

    print("KERNEL_OK")
</pallas_src>

<mosaic_0001>
module attributes {stable_mosaic.version = 11 : i64} {
  func.func @_vqa_fusion_kernel(%arg0: i32, %arg1: memref<16x256xf32, #tpu.memory_space<vmem>>, %arg2: memref<256x128xbf16, #tpu.memory_space<vmem>>, %arg3: memref<1x128xf32, #tpu.memory_space<vmem>>, %arg4: memref<128x128xbf16, #tpu.memory_space<vmem>>, %arg5: memref<1x128xf32, #tpu.memory_space<vmem>>, %arg6: memref<128x128xbf16, #tpu.memory_space<vmem>>, %arg7: memref<1x128xf32, #tpu.memory_space<vmem>>, %arg8: memref<16x128xf32, #tpu.memory_space<vmem>>) attributes {dimension_semantics = [#tpu.dimension_semantics<parallel>], iteration_bounds = array<i64: 1>, scalar_prefetch = 0 : i64, scratch_operands = 0 : i64, tpu.core_type = #tpu.core_type<tc>, window_params = [{transform_indices = @transform_0, window_bounds = array<i64: 16, 256>}, {pipeline_mode = #tpu.pipeline_mode<synchronous>, transform_indices = @transform_1, window_bounds = array<i64: 256, 128>}, {pipeline_mode = #tpu.pipeline_mode<synchronous>, transform_indices = @transform_2, window_bounds = array<i64: 1, 128>}, {pipeline_mode = #tpu.pipeline_mode<synchronous>, transform_indices = @transform_3, window_bounds = array<i64: 128, 128>}, {pipeline_mode = #tpu.pipeline_mode<synchronous>, transform_indices = @transform_4, window_bounds = array<i64: 1, 128>}, {pipeline_mode = #tpu.pipeline_mode<synchronous>, transform_indices = @transform_5, window_bounds = array<i64: 128, 128>}, {pipeline_mode = #tpu.pipeline_mode<synchronous>, transform_indices = @transform_6, window_bounds = array<i64: 1, 128>}, {transform_indices = @transform_7, window_bounds = array<i64: 16, 128>}]} {
    %c0 = arith.constant 0 : index
    %c0_0 = arith.constant 0 : index
    %0 = vector.load %arg1[%c0, %c0_0] : memref<16x256xf32, #tpu.memory_space<vmem>>, vector<16x256xf32>
    %1 = vector.extract_strided_slice %0 {offsets = [0, 0], sizes = [16, 128], strides = [1, 1]} : vector<16x256xf32> to vector<16x128xf32>
    %2 = vector.extract_strided_slice %0 {offsets = [0, 128], sizes = [16, 128], strides = [1, 1]} : vector<16x256xf32> to vector<16x128xf32>
    %3 = arith.mulf %1, %1 : vector<16x128xf32>
    %cst = arith.constant dense<0.000000e+00> : vector<16xf32>
    %4 = vector.multi_reduction <add>, %3, %cst [1] : vector<16x128xf32> to vector<16xf32>
    %5 = vector.shape_cast %4 : vector<16xf32> to vector<16x1xf32>
    %cst_1 = arith.constant 9.99999996E-13 : f32
    %6 = vector.broadcast %cst_1 : f32 to vector<16x1xf32>
    %7 = arith.addf %5, %6 : vector<16x1xf32>
    %8 = math.rsqrt %7 : vector<16x1xf32>
    %9 = arith.mulf %2, %2 : vector<16x128xf32>
    %cst_2 = arith.constant dense<0.000000e+00> : vector<16xf32>
    %10 = vector.multi_reduction <add>, %9, %cst_2 [1] : vector<16x128xf32> to vector<16xf32>
    %11 = vector.shape_cast %10 : vector<16xf32> to vector<16x1xf32>
    %cst_3 = arith.constant 9.99999996E-13 : f32
    %12 = vector.broadcast %cst_3 : f32 to vector<16x1xf32>
    %13 = arith.addf %11, %12 : vector<16x1xf32>
    %14 = math.rsqrt %13 : vector<16x1xf32>
    %15 = tpu.iota {dimensions = array<i32: 1>} : vector<16x256xi32>
    %c128_i32 = arith.constant 128 : i32
    %16 = vector.broadcast %c128_i32 : i32 to vector<16x256xi32>
    %17 = arith.cmpi slt, %15, %16 : vector<16x256xi32>
    %18 = vector.shape_cast %8 : vector<16x1xf32> to vector<16x1xf32>
    %19 = vector.broadcast %18 : vector<16x1xf32> to vector<16x256xf32>
    %20 = vector.shape_cast %14 : vector<16x1xf32> to vector<16x1xf32>
    %21 = vector.broadcast %20 : vector<16x1xf32> to vector<16x256xf32>
    %22 = arith.select %17, %19, %21 : vector<16x256xi1>, vector<16x256xf32>
    %23 = arith.mulf %0, %22 : vector<16x256xf32>
    %24 = arith.truncf %23 : vector<16x256xf32> to vector<16x256xbf16>
    %c0_4 = arith.constant 0 : index
    %c0_5 = arith.constant 0 : index
    %25 = vector.load %arg2[%c0_4, %c0_5] : memref<256x128xbf16, #tpu.memory_space<vmem>>, vector<256x128xbf16>
    %cst_6 = arith.constant dense<0.000000e+00> : vector<16x128xf32>
    %26 = tpu.matmul %24, %25, %cst_6 {dimension_numbers = #tpu.dot_dimension_numbers<[1], [0], [0], [1], [0, 0, 1, 1], [], []>} : vector<16x256xbf16>, vector<256x128xbf16>, vector<16x128xf32> -> vector<16x128xf32>
    %27 = arith.truncf %26 : vector<16x128xf32> to vector<16x128xbf16>
    %c0_7 = arith.constant 0 : index
    %c0_8 = arith.constant 0 : index
    %28 = vector.load %arg3[%c0_7, %c0_8] : memref<1x128xf32, #tpu.memory_space<vmem>>, vector<1x128xf32>
    %29 = arith.truncf %28 : vector<1x128xf32> to vector<1x128xbf16>
    %30 = vector.broadcast %29 : vector<1x128xbf16> to vector<16x128xbf16>
    %31 = arith.addf %27, %30 : vector<16x128xbf16>
    %cst_9 = arith.constant 0.000000e+00 : bf16
    %32 = vector.broadcast %cst_9 : bf16 to vector<16x128xbf16>
    %33 = arith.maximumf %31, %32 : vector<16x128xbf16>
    %c0_10 = arith.constant 0 : index
    %c0_11 = arith.constant 0 : index
    %34 = vector.load %arg4[%c0_10, %c0_11] : memref<128x128xbf16, #tpu.memory_space<vmem>>, vector<128x128xbf16>
    %cst_12 = arith.constant dense<0.000000e+00> : vector<16x128xf32>
    %35 = tpu.matmul %33, %34, %cst_12 {dimension_numbers = #tpu.dot_dimension_numbers<[1], [0], [0], [1], [0, 0, 1, 1], [], []>} : vector<16x128xbf16>, vector<128x128xbf16>, vector<16x128xf32> -> vector<16x128xf32>
    %36 = arith.truncf %35 : vector<16x128xf32> to vector<16x128xbf16>
    %c0_13 = arith.constant 0 : index
    %c0_14 = arith.constant 0 : index
    %37 = vector.load %arg5[%c0_13, %c0_14] : memref<1x128xf32, #tpu.memory_space<vmem>>, vector<1x128xf32>
    %38 = arith.truncf %37 : vector<1x128xf32> to vector<1x128xbf16>
    %39 = vector.broadcast %38 : vector<1x128xbf16> to vector<16x128xbf16>
    %40 = arith.addf %36, %39 : vector<16x128xbf16>
    %cst_15 = arith.constant 0.000000e+00 : bf16
    %41 = vector.broadcast %cst_15 : bf16 to vector<16x128xbf16>
    %42 = arith.maximumf %40, %41 : vector<16x128xbf16>
    %c0_16 = arith.constant 0 : index
    %c0_17 = arith.constant 0 : index
    %43 = vector.load %arg6[%c0_16, %c0_17] : memref<128x128xbf16, #tpu.memory_space<vmem>>, vector<128x128xbf16>
    %cst_18 = arith.constant dense<0.000000e+00> : vector<16x128xf32>
    %44 = tpu.matmul %42, %43, %cst_18 {dimension_numbers = #tpu.dot_dimension_numbers<[1], [0], [0], [1], [0, 0, 1, 1], [], []>} : vector<16x128xbf16>, vector<128x128xbf16>, vector<16x128xf32> -> vector<16x128xf32>
    %c0_19 = arith.constant 0 : index
    %c0_20 = arith.constant 0 : index
    %45 = vector.load %arg7[%c0_19, %c0_20] : memref<1x128xf32, #tpu.memory_space<vmem>>, vector<1x128xf32>
    %46 = vector.broadcast %45 : vector<1x128xf32> to vector<16x128xf32>
    %47 = arith.addf %44, %46 : vector<16x128xf32>
    %c0_21 = arith.constant 0 : index
    %c0_22 = arith.constant 0 : index
    %48 = vector.load %arg8[%c0_21, %c0_22] : memref<16x128xf32, #tpu.memory_space<vmem>>, vector<16x128xf32>
    tpu.vector_store %arg8[%c0_21, %c0_22], %47 {strides = array<i32>} : memref<16x128xf32, #tpu.memory_space<vmem>>, vector<16x128xf32>,
    return
  }
  func.func @transform_0(%arg0: i32) -> (i32, i32) {
    %c0_i32 = arith.constant 0 : i32
    %c0_i32_0 = arith.constant 0 : i32
    return %arg0, %c0_i32 : i32, i32
  }
  func.func @transform_1(%arg0: i32) -> (i32, i32) {
    %c0_i32 = arith.constant 0 : i32
    %c0_i32_0 = arith.constant 0 : i32
    %c0_i32_1 = arith.constant 0 : i32
    return %c0_i32, %c0_i32_0 : i32, i32
  }
  func.func @transform_2(%arg0: i32) -> (i32, i32) {
    %c0_i32 = arith.constant 0 : i32
    %c0_i32_0 = arith.constant 0 : i32
    %c0_i32_1 = arith.constant 0 : i32
    return %c0_i32, %c0_i32_0 : i32, i32
  }
  func.func @transform_3(%arg0: i32) -> (i32, i32) {
    %c0_i32 = arith.constant 0 : i32
    %c0_i32_0 = arith.constant 0 : i32
    %c0_i32_1 = arith.constant 0 : i32
    return %c0_i32, %c0_i32_0 : i32, i32
  }
  func.func @transform_4(%arg0: i32) -> (i32, i32) {
    %c0_i32 = arith.constant 0 : i32
    %c0_i32_0 = arith.constant 0 : i32
    %c0_i32_1 = arith.constant 0 : i32
    return %c0_i32, %c0_i32_0 : i32, i32
  }
  func.func @transform_5(%arg0: i32) -> (i32, i32) {
    %c0_i32 = arith.constant 0 : i32
    %c0_i32_0 = arith.constant 0 : i32
    %c0_i32_1 = arith.constant 0 : i32
    return %c0_i32, %c0_i32_0 : i32, i32
  }
  func.func @transform_6(%arg0: i32) -> (i32, i32) {
    %c0_i32 = arith.constant 0 : i32
    %c0_i32_0 = arith.constant 0 : i32
    %c0_i32_1 = arith.constant 0 : i32
    return %c0_i32, %c0_i32_0 : i32, i32
  }
  func.func @transform_7(%arg0: i32) -> (i32, i32) {
    %c0_i32 = arith.constant 0 : i32
    %c0_i32_0 = arith.constant 0 : i32
    return %arg0, %c0_i32 : i32, i32
  }
}

module attributes {stable_mosaic.version = 11 : i64} {
  func.func @_vqa_fusion_kernel(%arg0: i32, %arg1: memref<16x256xf32, #tpu.memory_space<vmem>>, %arg2: memref<256x128xbf16, #tpu.memory_space<vmem>>, %arg3: memref<1x128xf32, #tpu.memory_space<vmem>>, %arg4: memref<128x128xbf16, #tpu.memory_space<vmem>>, %arg5: memref<1x128xf32, #tpu.memory_space<vmem>>, %arg6: memref<128x128xbf16, #tpu.memory_space<vmem>>, %arg7: memref<1x128xf32, #tpu.memory_space<vmem>>, %arg8: memref<16x128xf32, #tpu.memory_space<vmem>>) attributes {dimension_semantics = [#tpu.dimension_semantics<parallel>], iteration_bounds = array<i64: 1>, scalar_prefetch = 0 : i64, scratch_operands = 0 : i64, tpu.core_type = #tpu.core_type<tc>, window_params = [{transform_indices = @transform_0, window_bounds = array<i64: 16, 256>}, {pipeline_mode = #tpu.pipeline_mode<synchronous>, transform_indices = @transform_1, window_bounds = array<i64: 256, 128>}, {pipeline_mode = #tpu.pipeline_mode<synchronous>, transform_indices = @transform_2, window_bounds = array<i64: 1, 128>}, {pipeline_mode = #tpu.pipeline_mode<synchronous>, transform_indices = @transform_3, window_bounds = array<i64: 128, 128>}, {pipeline_mode = #tpu.pipeline_mode<synchronous>, transform_indices = @transform_4, window_bounds = array<i64: 1, 128>}, {pipeline_mode = #tpu.pipeline_mode<synchronous>, transform_indices = @transform_5, window_bounds = array<i64: 128, 128>}, {pipeline_mode = #tpu.pipeline_mode<synchronous>, transform_indices = @transform_6, window_bounds = array<i64: 1, 128>}, {transform_indices = @transform_7, window_bounds = array<i64: 16, 128>}]} {
    %c0 = arith.constant 0 : index
    %c0_0 = arith.constant 0 : index
    %0 = vector.load %arg1[%c0, %c0_0] : memref<16x256xf32, #tpu.memory_space<vmem>>, vector<16x256xf32>
    %1 = vector.extract_strided_slice %0 {offsets = [0, 0], sizes = [16, 128], strides = [1, 1]} : vector<16x256xf32> to vector<16x128xf32>
    %2 = vector.extract_strided_slice %0 {offsets = [0, 128], sizes = [16, 128], strides = [1, 1]} : vector<16x256xf32> to vector<16x128xf32>
    %3 = arith.mulf %1, %1 : vector<16x128xf32>
    %cst = arith.constant dense<0.000000e+00> : vector<16xf32>
    %4 = vector.multi_reduction <add>, %3, %cst [1] : vector<16x128xf32> to vector<16xf32>
    %5 = vector.shape_cast %4 : vector<16xf32> to vector<16x1xf32>
    %cst_1 = arith.constant 9.99999996E-13 : f32
    %6 = vector.broadcast %cst_1 : f32 to vector<16x1xf32>
    %7 = arith.addf %5, %6 : vector<16x1xf32>
    %8 = math.rsqrt %7 : vector<16x1xf32>
    %9 = arith.mulf %2, %2 : vector<16x128xf32>
    %cst_2 = arith.constant dense<0.000000e+00> : vector<16xf32>
    %10 = vector.multi_reduction <add>, %9, %cst_2 [1] : vector<16x128xf32> to vector<16xf32>
    %11 = vector.shape_cast %10 : vector<16xf32> to vector<16x1xf32>
    %cst_3 = arith.constant 9.99999996E-13 : f32
    %12 = vector.broadcast %cst_3 : f32 to vector<16x1xf32>
    %13 = arith.addf %11, %12 : vector<16x1xf32>
    %14 = math.rsqrt %13 : vector<16x1xf32>
    %15 = tpu.iota {dimensions = array<i32: 1>} : vector<16x256xi32>
    %c128_i32 = arith.constant 128 : i32
    %16 = vector.broadcast %c128_i32 : i32 to vector<16x256xi32>
    %17 = arith.cmpi slt, %15, %16 : vector<16x256xi32>
    %18 = vector.shape_cast %8 : vector<16x1xf32> to vector<16x1xf32>
    %19 = vector.broadcast %18 : vector<16x1xf32> to vector<16x256xf32>
    %20 = vector.shape_cast %14 : vector<16x1xf32> to vector<16x1xf32>
    %21 = vector.broadcast %20 : vector<16x1xf32> to vector<16x256xf32>
    %22 = arith.select %17, %19, %21 : vector<16x256xi1>, vector<16x256xf32>
    %23 = arith.mulf %0, %22 : vector<16x256xf32>
    %24 = arith.truncf %23 : vector<16x256xf32> to vector<16x256xbf16>
    %c0_4 = arith.constant 0 : index
    %c0_5 = arith.constant 0 : index
    %25 = vector.load %arg2[%c0_4, %c0_5] : memref<256x128xbf16, #tpu.memory_space<vmem>>, vector<256x128xbf16>
    %cst_6 = arith.constant dense<0.000000e+00> : vector<16x128xf32>
    %26 = tpu.matmul %24, %25, %cst_6 {dimension_numbers = #tpu.dot_dimension_numbers<[1], [0], [0], [1], [0, 0, 1, 1], [], []>} : vector<16x256xbf16>, vector<256x128xbf16>, vector<16x128xf32> -> vector<16x128xf32>
    %27 = arith.truncf %26 : vector<16x128xf32> to vector<16x128xbf16>
    %c0_7 = arith.constant 0 : index
    %c0_8 = arith.constant 0 : index
    %28 = vector.load %arg3[%c0_7, %c0_8] : memref<1x128xf32, #tpu.memory_space<vmem>>, vector<1x128xf32>
    %29 = arith.truncf %28 : vector<1x128xf32> to vector<1x128xbf16>
    %30 = vector.broadcast %29 : vector<1x128xbf16> to vector<16x128xbf16>
    %31 = arith.addf %27, %30 : vector<16x128xbf16>
    %cst_9 = arith.constant 0.000000e+00 : bf16
    %32 = vector.broadcast %cst_9 : bf16 to vector<16x128xbf16>
    %33 = arith.maximumf %31, %32 : vector<16x128xbf16>
    %c0_10 = arith.constant 0 : index
    %c0_11 = arith.constant 0 : index
    %34 = vector.load %arg4[%c0_10, %c0_11] : memref<128x128xbf16, #tpu.memory_space<vmem>>, vector<128x128xbf16>
    %cst_12 = arith.constant dense<0.000000e+00> : vector<16x128xf32>
    %35 = tpu.matmul %33, %34, %cst_12 {dimension_numbers = #tpu.dot_dimension_numbers<[1], [0], [0], [1], [0, 0, 1, 1], [], []>} : vector<16x128xbf16>, vector<128x128xbf16>, vector<16x128xf32> -> vector<16x128xf32>
    %36 = arith.truncf %35 : vector<16x128xf32> to vector<16x128xbf16>
    %c0_13 = arith.constant 0 : index
    %c0_14 = arith.constant 0 : index
    %37 = vector.load %arg5[%c0_13, %c0_14] : memref<1x128xf32, #tpu.memory_space<vmem>>, vector<1x128xf32>
    %38 = arith.truncf %37 : vector<1x128xf32> to vector<1x128xbf16>
    %39 = vector.broadcast %38 : vector<1x128xbf16> to vector<16x128xbf16>
    %40 = arith.addf %36, %39 : vector<16x128xbf16>
    %cst_15 = arith.constant 0.000000e+00 : bf16
    %41 = vector.broadcast %cst_15 : bf16 to vector<16x128xbf16>
    %42 = arith.maximumf %40, %41 : vector<16x128xbf16>
    %c0_16 = arith.constant 0 : index
    %c0_17 = arith.constant 0 : index
    %43 = vector.load %arg6[%c0_16, %c0_17] : memref<128x128xbf16, #tpu.memory_space<vmem>>, vector<128x128xbf16>
    %cst_18 = arith.constant dense<0.000000e+00> : vector<16x128xf32>
    %44 = tpu.matmul %42, %43, %cst_18 {dimension_numbers = #tpu.dot_dimension_numbers<[1], [0], [0], [1], [0, 0, 1, 1], [], []>} : vector<16x128xbf16>, vector<128x128xbf16>, vector<16x128xf32> -> vector<16x128xf32>
    %c0_19 = arith.constant 0 : index
    %c0_20 = arith.constant 0 : index
    %45 = vector.load %arg7[%c0_19, %c0_20] : memref<1x128xf32, #tpu.memory_space<vmem>>, vector<1x128xf32>
    %46 = vector.broadcast %45 : vector<1x128xf32> to vector<16x128xf32>
    %47 = arith.addf %44, %46 : vector<16x128xf32>
    %c0_21 = arith.constant 0 : index
    %c0_22 = arith.constant 0 : index
    %48 = vector.load %arg8[%c0_21, %c0_22] : memref<16x128xf32, #tpu.memory_space<vmem>>, vector<16x128xf32>
    tpu.vector_store %arg8[%c0_21, %c0_22], %47 {strides = array<i32>} : memref<16x128xf32, #tpu.memory_space<vmem>>, vector<16x128xf32>,
    return
  }
  func.func @transform_0(%arg0: i32) -> (i32, i32) {
    %c0_i32 = arith.constant 0 : i32
    %c0_i32_0 = arith.constant 0 : i32
    return %arg0, %c0_i32 : i32, i32
  }
  func.func @transform_1(%arg0: i32) -> (i32, i32) {
    %c0_i32 = arith.constant 0 : i32
    %c0_i32_0 = arith.constant 0 : i32
    %c0_i32_1 = arith.constant 0 : i32
    return %c0_i32, %c0_i32_0 : i32, i32
  }
  func.func @transform_2(%arg0: i32) -> (i32, i32) {
    %c0_i32 = arith.constant 0 : i32
    %c0_i32_0 = arith.constant 0 : i32
    %c0_i32_1 = arith.constant 0 : i32
    return %c0_i32, %c0_i32_0 : i32, i32
  }
  func.func @transform_3(%arg0: i32) -> (i32, i32) {
    %c0_i32 = arith.constant 0 : i32
    %c0_i32_0 = arith.constant 0 : i32
    %c0_i32_1 = arith.constant 0 : i32
    return %c0_i32, %c0_i32_0 : i32, i32
  }
  func.func @transform_4(%arg0: i32) -> (i32, i32) {
    %c0_i32 = arith.constant 0 : i32
    %c0_i32_0 = arith.constant 0 : i32
    %c0_i32_1 = arith.constant 0 : i32
    return %c0_i32, %c0_i32_0 : i32, i32
  }
  func.func @transform_5(%arg0: i32) -> (i32, i32) {
    %c0_i32 = arith.constant 0 : i32
    %c0_i32_0 = arith.constant 0 : i32
    %c0_i32_1 = arith.constant 0 : i32
    return %c0_i32, %c0_i32_0 : i32, i32
  }
  func.func @transform_6(%arg0: i32) -> (i32, i32) {
    %c0_i32 = arith.constant 0 : i32
    %c0_i32_0 = arith.constant 0 : i32
    %c0_i32_1 = arith.constant 0 : i32
    return %c0_i32, %c0_i32_0 : i32, i32
  }
  func.func @transform_7(%arg0: i32) -> (i32, i32) {
    %c0_i32 = arith.constant 0 : i32
    %c0_i32_0 = arith.constant 0 : i32
    return %arg0, %c0_i32 : i32, i32
  }
}

</mosaic_0001>

<bundles_post_ra>
// kernel: tpu_custom_call.1
= control target key start
LH: loop header
LB: loop body
LE: loop exit
PB: predicated region body
PF: predicated region fallthrough
CT: control target
= control target key end

     0   :  { %12 = vsyncpa [#allocation3], 0  ;;  %s947_s0 = inlined_call_operand.hbm [shape: f32[16,256], index: 0, kind: input, shape index: {}]   ;;  %s948_s1 = inlined_call_operand.hbm [shape: bf16[256,128], index: 1, kind: input, shape index: {}]   ;;  %s949_s2 = inlined_call_operand.vmem [shape: f32[1,128], index: 2, kind: input, shape index: {}]   ;;  %s950_s3 = inlined_call_operand.hbm [shape: bf16[128,128], index: 3, kind: input, shape index: {}]   ;;  %s951_s4 = inlined_call_operand.vmem [shape: f32[1,128], index: 4, kind: input, shape index: {}]   ;;  %s952_s5 = inlined_call_operand.hbm [shape: bf16[128,128], index: 5, kind: input, shape index: {}]   ;;  %s953_s6 = inlined_call_operand.vmem [shape: f32[1,128], index: 6, kind: input, shape index: {}]   ;;  %s954_s7 = inlined_call_operand.hbm [shape: f32[16,128], index: 7, kind: output, shape index: {}]  }
   0x1   :  { %13 = vsyncpa [#allocation6], 0 }
   0x2   :  { %14 = vsyncpa [#allocation9], 0  ;;  %s33_s26 = sshll.u32 %s948_s1, 4  ;;  %s34_s26 = int_to_ptr.hbm [resolvable:$true] %s33_s26 }
   0x3   :  { %15 = vsyncpa [#allocation4], 0  ;;  %s852_s27 = smov [#allocation5]   ;;  %s20_s8 = sshll.u32 %s947_s0, 4  ;;  %s21_s8 = int_to_ptr.hbm [resolvable:$true] %s20_s8 }
   0x4   :  { %s35_s28 = sshll.u32 %s852_s27, 4  ;;  %s853_s9 = smov 64   ;;  %s36_s28 = int_to_ptr.vmem [resolvable:$true] %s35_s28 }
   0x5   :  { %s854_s10 = smov 4   ;;  %s855_s11 = smov [#allocation2]  }
   0x6   :  { %41 = dma.hbm_to_vmem [thread:$0]  %s34_s26, 2048, %s36_s28, [#allocation6], %s853_s9, %s853_s9, %s854_s10  }
   0x7   :  { %s22_s12 = sshll.u32 %s855_s11, 4  ;;  %s856_s13 = smov 256   ;;  %s23_s12 = int_to_ptr.vmem [resolvable:$true] %s22_s12 }
   0x8   :  { %s857_s14 = smov 16   ;;  %s48_s16 = sshll.u32 %s950_s3, 4  ;;  %s49_s16 = int_to_ptr.hbm [resolvable:$true] %s48_s16 }
   0x9   :  { %28 = dma.hbm_to_vmem [thread:$0]  %s21_s8, 512, %s23_s12, [#allocation3], %s856_s13, %s856_s13, %s857_s14  }
   0xa   :  { %s858_s17 = smov [#allocation7]   ;;  %s63_s20 = sshll.u32 %s952_s5, 4  ;;  %s64_s20 = int_to_ptr.hbm [resolvable:$true] %s63_s20 }
   0xb   :  { %s50_s18 = sshll.u32 %s858_s17, 4  ;;  %s859_s21 = smov [#allocation8]   ;;  %s51_s18 = int_to_ptr.vmem [resolvable:$true] %s50_s18 }
   0xc   :  { %56 = dma.hbm_to_vmem [thread:$0]  %s49_s16, 1024, %s51_s18, [#allocation6], %s853_s9, %s853_s9, %s854_s10  }
   0xd   :  { %s65_s22 = sshll.u32 %s859_s21, 4  ;;  %s66_s22 = int_to_ptr.vmem [resolvable:$true] %s65_s22 }
   0xe   :  { %71 = dma.hbm_to_vmem [thread:$0]  %s64_s20, 1024, %s66_s22, [#allocation9], %s853_s9, %s853_s9, %s854_s10  }
   0xf   :  { %844 = dma.done.wait [#allocation3], 512  }
  0x10   :  { %845 = vsyncadd [#allocation3], 4294966784 }
  0x11   :  { %846 = dma.done.wait [#allocation6], 3072  }
  0x12   :  { %847 = vsyncadd [#allocation6], 4294964224 }
  0x13   :  { %848 = dma.done.wait [#allocation9], 1024  }
  0x14   :  { %849 = vsyncadd [#allocation9], 4294966272  ;;  %v915_v0 = vld [vmem:[#allocation2 + $0x8] sm:$0xff]  ;;  %v917_v1 = vld [vmem:[#allocation2] sm:$0xff]  ;;  %s529_s29 = sshll.u32 %s954_s7, 4  ;;  %s861_s30 = smov 128   ;;  %s530_s29 = int_to_ptr.hbm [resolvable:$true] %s529_s29 }
  0x15   :  { %v122_v2 = vmul.f32 %v915_v0, %v915_v0  ;;  %v94_v3 = vmul.f32 %v917_v1, %v917_v1  ;;  %v923_v4 = vld [vmem:[#allocation2 + $0x18] sm:$0xff]  ;;  %v925_v5 = vld [vmem:[#allocation2 + $0x10] sm:$0xff]  ;;  %v677_v12 = vld [vmem:[#allocation5 + $0x28] sm:$0xff]  ;;  %s862_s8 = smov 8  }
  0x16   :  { %v123_v6 = vmul.f32 %v923_v4, %v923_v4  ;;  %v95_v7 = vmul.f32 %v925_v5, %v925_v5  ;;  %v679_v8 = vld [vmem:[#allocation5 + $0x38] sm:$0xff]  ;;  %v678_v10 = vld [vmem:[#allocation5 + $0x30] sm:$0xff]  ;;  %v685_v13 = vld [vmem:[#allocation5 + $0x68] sm:$0xff] }
  0x17   :  { %124 = vadd.xlane.f32.xlu1 %v122_v2  ;;  %96 = vadd.xlane.f32.xlu0 %v94_v3  ;;  %v687_v9 = vld [vmem:[#allocation5 + $0x78] sm:$0xff]  ;;  %v686_v11 = vld [vmem:[#allocation5 + $0x70] sm:$0xff]  ;;  %v676_v14 = vld [vmem:[#allocation5 + $0x20] sm:$0xff] }
  0x18   :  { %293 = vmatpush.bf16.msra.mxu0 %v679_v8  ;;  %307 = vmatpush.bf16.msra.mxu1 %v687_v9  ;;  %v684_v15 = vld [vmem:[#allocation5 + $0x60] sm:$0xff]  ;;  %v675_v16 = vld [vmem:[#allocation5 + $0x18] sm:$0xff]  ;;  %v674_v18 = vld [vmem:[#allocation5 + $0x10] sm:$0xff] }
  0x19   :  { %v683_v17 = vld [vmem:[#allocation5 + $0x58] sm:$0xff]  ;;  %v682_v19 = vld [vmem:[#allocation5 + $0x50] sm:$0xff]  ;;  %v673_v20 = vld [vmem:[#allocation5 + $0x8] sm:$0xff] }
  0x1a   :  { %v681_v21 = vld [vmem:[#allocation5 + $0x48] sm:$0xff]  ;;  %v672_v22 = vld [vmem:[#allocation5] sm:$0xff]  ;;  %v695_v28 = vld [vmem:[#allocation7 + $0x38] sm:$0xff] }
  0x1b   :  { %v680_v23 = vld [vmem:[#allocation5 + $0x40] sm:$0xff]  ;;  %405 = vmatpush.bf16.msra.mxu2 %v695_v28  ;;  %v694_v29 = vld [vmem:[#allocation7 + $0x30] sm:$0xff]  ;;  %v693_v32 = vld [vmem:[#allocation7 + $0x28] sm:$0xff] }
  0x1c   :  { %294 = vmatpush.bf16.msra.mxu0 %v678_v10  ;;  %308 = vmatpush.bf16.msra.mxu1 %v686_v11  ;;  %v692_v9 = vld [vmem:[#allocation7 + $0x20] sm:$0xff]  ;;  %v691_v10 = vld [vmem:[#allocation7 + $0x18] sm:$0xff]  ;;  %v690_v11 = vld [vmem:[#allocation7 + $0x10] sm:$0xff] }
  0x1f   :  { %126 = vadd.xlane.f32.xlu1 %v123_v6  ;;  %98 = vadd.xlane.f32.xlu0 %v95_v7 }
  0x20   :  { %295 = vmatpush.bf16.msra.mxu0 %v677_v12  ;;  %309 = vmatpush.bf16.msra.mxu1 %v685_v13  ;;  %v689_v12 = vld [vmem:[#allocation7 + $0x8] sm:$0xff]  ;;  %v688_v13 = vld [vmem:[#allocation7] sm:$0xff] }
  0x21   :  { %406 = vmatpush.bf16.msra.mxu2 %v694_v29 }
  0x24   :  { %296 = vmatpush.bf16.msra.mxu0 %v676_v14  ;;  %310 = vmatpush.bf16.msra.mxu1 %v684_v15 }
  0x25   :  { %407 = vmatpush.bf16.msra.mxu2 %v693_v32 }
  0x28   :  { %297 = vmatpush.bf16.msra.mxu0 %v675_v16  ;;  %311 = vmatpush.bf16.msra.mxu1 %v683_v17 }
  0x29   :  { %408 = vmatpush.bf16.msra.mxu2 %v692_v9 }
  0x2c   :  { %298 = vmatpush.bf16.msra.mxu0 %v674_v18  ;;  %312 = vmatpush.bf16.msra.mxu1 %v682_v19 }
  0x2d   :  { %409 = vmatpush.bf16.msra.mxu2 %v691_v10 }
  0x30   :  { %299 = vmatpush.bf16.msra.mxu0 %v673_v20  ;;  %313 = vmatpush.bf16.msra.mxu1 %v681_v21 }
  0x31   :  { %410 = vmatpush.bf16.msra.mxu2 %v690_v11 }
  0x34   :  { %300 = vmatpush.bf16.msra.mxu0 %v672_v22  ;;  %314 = vmatpush.bf16.msra.mxu1 %v680_v23 }
  0x35   :  { %411 = vmatpush.bf16.msra.mxu2 %v689_v12 }
  0x39   :  { %412 = vmatpush.bf16.msra.mxu2 %v688_v13 }
  0x8a   :  { %v125_v24 = vpop.xlane.xlu1 %124  ;;  %v97_v25 = vpop.xlane.xlu0 %96 }
  0x8b   :  { %v128_v26 = vadd.f32 1e-12, %v125_v24  ;;  %v100_v27 = vadd.f32 1e-12, %v97_v25 }
  0x8d   :  { %716 = vrsqrt.f32 %v128_v26  ;;  %vm136_vm2 = vweird.f32 %v128_v26  ;;  %vm108_vm5 = vweird.f32 %v100_v27 }
  0x8e   :  { %718 = vrsqrt.f32 %v100_v27 }
  0x92   :  { %v127_v30 = vpop.xlane.xlu1 %126  ;;  %v99_v31 = vpop.xlane.xlu0 %98 }
  0x93   :  { %v717_v33 = vpop.eup %716  ;;  %v129_v34 = vadd.f32 1e-12, %v127_v30  ;;  %v101_v35 = vadd.f32 1e-12, %v99_v31 }
  0x94   :  { %v719_v36 = vpop.eup %718  ;;  %v131_v37 = vmul.f32 %v717_v33, %v128_v26  ;;  %vm137_vm0 = vweird.f32 %v717_v33 }
  0x95   :  { %v103_v38 = vmul.f32 %v719_v36, %v100_v27  ;;  %720 = vrsqrt.f32 %v129_v34  ;;  %vm109_vm1 = vweird.f32 %v719_v36  ;;  %vm138_vm4 = vmor %vm136_vm2, %vm137_vm0  ;;  %vm146_vm8 = vweird.f32 %v129_v34 }
  0x96   :  { %v132_v39 = vmul.f32 %v717_v33, %v131_v37  ;;  %722 = vrsqrt.f32 %v101_v35  ;;  %vm110_vm7 = vmor %vm108_vm5, %vm109_vm1  ;;  %vm118_vm10 = vweird.f32 %v101_v35  ;;  %v696_v37 = vld [vmem:[#allocation8] sm:$0xff] }
  0x97   :  { %v104_v40 = vmul.f32 %v719_v36, %v103_v38  ;;  %v421_v38 = vld [vmem:[%s951_s4] sm:$0x1]  ;;  %s860_s4 = smov [#allocation10]  }
  0x98   :  { %v133_v41 = vmul.f32 0.5, %v132_v39  ;;  %v422_v39 = vpack.c.bf16 %v421_v38, %v421_v38  ;;  %s527_s26 = sshll.u32 %s860_s4, 4  ;;  %s528_s26 = int_to_ptr.vmem [resolvable:$true] %s527_s26 }
  0x99   :  { %v105_v42 = vmul.f32 0.5, %v104_v40 }
  0x9a   :  { %v134_v45 = vsub.f32 1.5, %v133_v41  ;;  %v424_v40 = vpack.i.b16 %v422_v39, %v422_v39 }
  0x9b   :  { %v721_v43 = vpop.eup %720  ;;  %v106_v47 = vsub.f32 1.5, %v105_v42 }
  0x9c   :  { %v723_v44 = vpop.eup %722  ;;  %v141_v46 = vmul.f32 %v721_v43, %v129_v34  ;;  %v135_v52 = vmul.f32 %v717_v33, %v134_v45  ;;  %vm147_vm3 = vweird.f32 %v721_v43  ;;  %v699_v34 = vld [vmem:[#allocation8 + $0x18] sm:$0xff] }
  0x9d   :  { %v113_v48 = vmul.f32 %v723_v44, %v101_v35  ;;  %v107_v54 = vmul.f32 %v719_v36, %v106_v47  ;;  %vm119_vm6 = vweird.f32 %v723_v44  ;;  %vm148_vm9 = vmor %vm146_vm8, %vm147_vm3  ;;  %v698_v35 = vld [vmem:[#allocation8 + $0x10] sm:$0xff] }
  0x9e   :  { %v142_v49 = vmul.f32 %v721_v43, %v141_v46  ;;  %v139_v57 = vsel %vm138_vm4, %v717_v33, %v135_v52  ;;  %vm120_vm11 = vmor %vm118_vm10, %vm119_vm6  ;;  %v700_v33 = vld [vmem:[#allocation8 + $0x20] sm:$0xff] }
  0x9f   :  { %v114_v50 = vmul.f32 %v723_v44, %v113_v48  ;;  %v111_v59 = vsel %vm110_vm7, %v719_v36, %v107_v54  ;;  %v160_v63 = vmul.f32 %v139_v57, %v915_v0  ;;  %v703_v0 = vld [vmem:[#allocation8 + $0x38] sm:$0xff]  ;;  %v697_v36 = vld [vmem:[#allocation8 + $0x8] sm:$0xff]  ;;  %v715_v54 = vld [vmem:[%s953_s6] ss:$0 sm:$0xff] }
  0xa0   :  { %v143_v51 = vmul.f32 0.5, %v142_v49  ;;  %v159_v3 = vmul.f32 %v111_v59, %v917_v1  ;;  %507 = vmatpush.bf16.msra.mxu3 %v703_v0  ;;  %v323_v1 = vld [vmem:[%s949_s2] sm:$0x1] }
  0xa1   :  { %v115_v53 = vmul.f32 0.5, %v114_v50  ;;  %v324_v14 = vpack.c.bf16 %v323_v1, %v323_v1 }
  0xa2   :  { %v144_v55 = vsub.f32 1.5, %v143_v51 }
  0xa3   :  { %v116_v56 = vsub.f32 1.5, %v115_v53  ;;  %v326_v18 = vpack.i.b16 %v324_v14, %v324_v14 }
  0xa4   :  { %v145_v58 = vmul.f32 %v721_v43, %v144_v55 }
  0xa5   :  { %v117_v60 = vmul.f32 %v723_v44, %v116_v56  ;;  %v328_v20 = vperm.slane %v326_v18, 0 }
  0xa6   :  { %v149_v61 = vsel %vm148_vm9, %v721_v43, %v145_v58  ;;  %v426_v43 = vperm.slane %v424_v40, 0 }
  0xa7   :  { %v121_v62 = vsel %vm120_vm11, %v723_v44, %v117_v60  ;;  %v162_v2 = vmul.f32 %v149_v61, %v923_v4  ;;  %v702_v4 = vld [vmem:[#allocation8 + $0x30] sm:$0xff]  ;;  %v331_v24 = vunpack.c.l.bf16 %v328_v20 }
  0xa8   :  { %v161_v6 = vmul.f32 %v121_v62, %v925_v5  ;;  %508 = vmatpush.bf16.msra.mxu3 %v702_v4  ;;  %v701_v5 = vld [vmem:[#allocation8 + $0x28] sm:$0xff]  ;;  %v429_v45 = vunpack.c.l.bf16 %v426_v43 }
  0xa9   :  { %v164_v7 = vpack.c.bf16 %v162_v2, %v160_v63 }
  0xaa   :  { %v163_v8 = vpack.c.bf16 %v161_v6, %v159_v3 }
  0xab   :  { %315 = vmatmul.bf16.vlgmr.msra.gmra.mxu1 %v164_v7 }
  0xac   :  { %301 = vmatmul.bf16.vlgmr.msra.gmra.mxu0 %v163_v8  ;;  %509 = vmatpush.bf16.msra.mxu3 %v701_v5 }
  0xb0   :  { %510 = vmatpush.bf16.msra.mxu3 %v700_v33 }
  0xb4   :  { %511 = vmatpush.bf16.msra.mxu3 %v699_v34 }
  0xb8   :  { %512 = vmatpush.bf16.msra.mxu3 %v698_v35 }
  0xbc   :  { %513 = vmatpush.bf16.msra.mxu3 %v697_v36 }
  0xc0   :  { %514 = vmatpush.bf16.msra.mxu3 %v696_v37 }
 0x128   :  { %v316_v15 = vpop.f32.mrf.mxu1 }
 0x129   :  { %v302_v16 = vpop.f32.mrf.mxu0 }
 0x12a   :  { %v317_v17 = vadd.f32 %v316_v15, %v302_v16 }
 0x12c   :  { %v321_v19 = vpack.c.bf16 %v317_v17, %v317_v17 }
 0x12e   :  { %v329_v23 = vunpack.c.l.bf16 %v321_v19 }
 0x130   :  { %v318_v21 = vpop.f32.mrf.mxu1  ;;  %v332_v27 = vadd.f32 %v331_v24, %v329_v23 }
 0x131   :  { %v304_v22 = vpop.f32.mrf.mxu0 }
 0x132   :  { %v319_v25 = vadd.f32 %v318_v21, %v304_v22  ;;  %v338_v30 = vmax.f32 %v332_v27, 0.0 }
 0x134   :  { %v322_v26 = vpack.c.bf16 %v319_v25, %v319_v25 }
 0x136   :  { %v330_v28 = vunpack.c.l.bf16 %v322_v26 }
 0x138   :  { %v333_v29 = vadd.f32 %v331_v24, %v330_v28 }
 0x13a   :  { %v339_v31 = vmax.f32 %v333_v29, 0.0 }
 0x13c   :  { %v340_v32 = vpack.c.bf16 %v339_v31, %v338_v30 }
 0x13e   :  { %413 = vmatmul.bf16.vlgmr.msra.gmra.mxu2 %v340_v32 }
 0x1c1   :  { %v414_v41 = vpop.f32.mrf.mxu2 }
 0x1c2   :  { %v419_v42 = vpack.c.bf16 %v414_v41, %v414_v41 }
 0x1c4   :  { %v427_v44 = vunpack.c.l.bf16 %v419_v42 }
 0x1c6   :  { %v430_v48 = vadd.f32 %v429_v45, %v427_v44 }
 0x1c8   :  { %v436_v52 = vmax.f32 %v430_v48, 0.0 }
 0x1c9   :  { %v416_v46 = vpop.f32.mrf.mxu2 }
 0x1ca   :  { %v420_v47 = vpack.c.bf16 %v416_v46, %v416_v46 }
 0x1cc   :  { %v428_v49 = vunpack.c.l.bf16 %v420_v47 }
 0x1ce   :  { %v431_v50 = vadd.f32 %v429_v45, %v428_v49 }
 0x1d0   :  { %v437_v51 = vmax.f32 %v431_v50, 0.0 }
 0x1d2   :  { %v438_v53 = vpack.c.bf16 %v437_v51, %v436_v52 }
 0x1d4   :  { %515 = vmatmul.bf16.vlgmr.msra.gmra.mxu3 %v438_v53 }
 0x257   :  { %v516_v55 = vpop.f32.mrf.mxu3 }
 0x258   :  { %v517_v56 = vadd.f32 %v715_v54, %v516_v55 }
 0x25a   :  { %521 = vst [vmem:[#allocation10] sm:$0xff] %v517_v56 }
 0x25f   :  { %v518_v57 = vpop.f32.mrf.mxu3 }
 0x260   :  { %v519_v58 = vadd.f32 %v715_v54, %v518_v57 }
 0x262   :  { %522 = vst [vmem:[#allocation10 + $0x8] sm:$0xff] %v519_v58 }
 0x263   :  { %535 = dma.vmem_to_hbm [thread:$0]  %s528_s26, 256, %s530_s29, [#allocation4], %s861_s30, %s861_s30, %s862_s8  }
 0x264   :  { %850 = dma.done.wait [#allocation4], 256  }
 0x265   :  { %851 = vsyncadd [#allocation4], 4294967040 }
 0x266   :  { %540 = vsyncpa [#allocation3], 1 }
 0x267   :  { %541 = vsyncpa [#allocation6], 1 }
 0x268   :  { %542 = vsyncpa [#allocation9], 1 }
 0x269   :  { %543 = vsyncpa [#allocation4], 1 }

// kernel: tpu_custom_call.1
= control target key start
LH: loop header
LB: loop body
LE: loop exit
PB: predicated region body
PF: predicated region fallthrough
CT: control target
= control target key end

     0   :  { %12 = vsyncpa [#allocation3], 0  ;;  %s947_s0 = inlined_call_operand.hbm [shape: f32[16,256], index: 0, kind: input, shape index: {}]   ;;  %s948_s1 = inlined_call_operand.hbm [shape: bf16[256,128], index: 1, kind: input, shape index: {}]   ;;  %s949_s2 = inlined_call_operand.vmem [shape: f32[1,128], index: 2, kind: input, shape index: {}]   ;;  %s950_s3 = inlined_call_operand.hbm [shape: bf16[128,128], index: 3, kind: input, shape index: {}]   ;;  %s951_s4 = inlined_call_operand.vmem [shape: f32[1,128], index: 4, kind: input, shape index: {}]   ;;  %s952_s5 = inlined_call_operand.hbm [shape: bf16[128,128], index: 5, kind: input, shape index: {}]   ;;  %s953_s6 = inlined_call_operand.vmem [shape: f32[1,128], index: 6, kind: input, shape index: {}]   ;;  %s954_s7 = inlined_call_operand.hbm [shape: f32[16,128], index: 7, kind: output, shape index: {}]  }
   0x1   :  { %13 = vsyncpa [#allocation6], 0 }
   0x2   :  { %14 = vsyncpa [#allocation9], 0  ;;  %s33_s26 = sshll.u32 %s948_s1, 4  ;;  %s34_s26 = int_to_ptr.hbm [resolvable:$true] %s33_s26 }
   0x3   :  { %15 = vsyncpa [#allocation4], 0  ;;  %s852_s27 = smov [#allocation5]   ;;  %s20_s8 = sshll.u32 %s947_s0, 4  ;;  %s21_s8 = int_to_ptr.hbm [resolvable:$true] %s20_s8 }
   0x4   :  { %s35_s28 = sshll.u32 %s852_s27, 4  ;;  %s853_s9 = smov 64   ;;  %s36_s28 = int_to_ptr.vmem [resolvable:$true] %s35_s28 }
   0x5   :  { %s854_s10 = smov 4   ;;  %s855_s11 = smov [#allocation2]  }
   0x6   :  { %41 = dma.hbm_to_vmem [thread:$0]  %s34_s26, 2048, %s36_s28, [#allocation6], %s853_s9, %s853_s9, %s854_s10  }
   0x7   :  { %s22_s12 = sshll.u32 %s855_s11, 4  ;;  %s856_s13 = smov 256   ;;  %s23_s12 = int_to_ptr.vmem [resolvable:$true] %s22_s12 }
   0x8   :  { %s857_s14 = smov 16   ;;  %s48_s16 = sshll.u32 %s950_s3, 4  ;;  %s49_s16 = int_to_ptr.hbm [resolvable:$true] %s48_s16 }
   0x9   :  { %28 = dma.hbm_to_vmem [thread:$0]  %s21_s8, 512, %s23_s12, [#allocation3], %s856_s13, %s856_s13, %s857_s14  }
   0xa   :  { %s858_s17 = smov [#allocation7]   ;;  %s63_s20 = sshll.u32 %s952_s5, 4  ;;  %s64_s20 = int_to_ptr.hbm [resolvable:$true] %s63_s20 }
   0xb   :  { %s50_s18 = sshll.u32 %s858_s17, 4  ;;  %s859_s21 = smov [#allocation8]   ;;  %s51_s18 = int_to_ptr.vmem [resolvable:$true] %s50_s18 }
   0xc   :  { %56 = dma.hbm_to_vmem [thread:$0]  %s49_s16, 1024, %s51_s18, [#allocation6], %s853_s9, %s853_s9, %s854_s10  }
   0xd   :  { %s65_s22 = sshll.u32 %s859_s21, 4  ;;  %s66_s22 = int_to_ptr.vmem [resolvable:$true] %s65_s22 }
   0xe   :  { %71 = dma.hbm_to_vmem [thread:$0]  %s64_s20, 1024, %s66_s22, [#allocation9], %s853_s9, %s853_s9, %s854_s10  }
   0xf   :  { %844 = dma.done.wait [#allocation3], 512  }
  0x10   :  { %845 = vsyncadd [#allocation3], 4294966784 }
  0x11   :  { %846 = dma.done.wait [#allocation6], 3072  }
  0x12   :  { %847 = vsyncadd [#allocation6], 4294964224 }
  0x13   :  { %848 = dma.done.wait [#allocation9], 1024  }
  0x14   :  { %849 = vsyncadd [#allocation9], 4294966272  ;;  %v915_v0 = vld [vmem:[#allocation2 + $0x8] sm:$0xff]  ;;  %v917_v1 = vld [vmem:[#allocation2] sm:$0xff]  ;;  %s529_s29 = sshll.u32 %s954_s7, 4  ;;  %s861_s30 = smov 128   ;;  %s530_s29 = int_to_ptr.hbm [resolvable:$true] %s529_s29 }
  0x15   :  { %v122_v2 = vmul.f32 %v915_v0, %v915_v0  ;;  %v94_v3 = vmul.f32 %v917_v1, %v917_v1  ;;  %v923_v4 = vld [vmem:[#allocation2 + $0x18] sm:$0xff]  ;;  %v925_v5 = vld [vmem:[#allocation2 + $0x10] sm:$0xff]  ;;  %v677_v12 = vld [vmem:[#allocation5 + $0x28] sm:$0xff]  ;;  %s862_s8 = smov 8  }
  0x16   :  { %v123_v6 = vmul.f32 %v923_v4, %v923_v4  ;;  %v95_v7 = vmul.f32 %v925_v5, %v925_v5  ;;  %v679_v8 = vld [vmem:[#allocation5 + $0x38] sm:$0xff]  ;;  %v678_v10 = vld [vmem:[#allocation5 + $0x30] sm:$0xff]  ;;  %v685_v13 = vld [vmem:[#allocation5 + $0x68] sm:$0xff] }
  0x17   :  { %124 = vadd.xlane.f32.xlu1 %v122_v2  ;;  %96 = vadd.xlane.f32.xlu0 %v94_v3  ;;  %v687_v9 = vld [vmem:[#allocation5 + $0x78] sm:$0xff]  ;;  %v686_v11 = vld [vmem:[#allocation5 + $0x70] sm:$0xff]  ;;  %v676_v14 = vld [vmem:[#allocation5 + $0x20] sm:$0xff] }
  0x18   :  { %293 = vmatpush.bf16.msra.mxu0 %v679_v8  ;;  %307 = vmatpush.bf16.msra.mxu1 %v687_v9  ;;  %v684_v15 = vld [vmem:[#allocation5 + $0x60] sm:$0xff]  ;;  %v675_v16 = vld [vmem:[#allocation5 + $0x18] sm:$0xff]  ;;  %v674_v18 = vld [vmem:[#allocation5 + $0x10] sm:$0xff] }
  0x19   :  { %v683_v17 = vld [vmem:[#allocation5 + $0x58] sm:$0xff]  ;;  %v682_v19 = vld [vmem:[#allocation5 + $0x50] sm:$0xff]  ;;  %v673_v20 = vld [vmem:[#allocation5 + $0x8] sm:$0xff] }
  0x1a   :  { %v681_v21 = vld [vmem:[#allocation5 + $0x48] sm:$0xff]  ;;  %v672_v22 = vld [vmem:[#allocation5] sm:$0xff]  ;;  %v695_v28 = vld [vmem:[#allocation7 + $0x38] sm:$0xff] }
  0x1b   :  { %v680_v23 = vld [vmem:[#allocation5 + $0x40] sm:$0xff]  ;;  %405 = vmatpush.bf16.msra.mxu2 %v695_v28  ;;  %v694_v29 = vld [vmem:[#allocation7 + $0x30] sm:$0xff]  ;;  %v693_v32 = vld [vmem:[#allocation7 + $0x28] sm:$0xff] }
  0x1c   :  { %294 = vmatpush.bf16.msra.mxu0 %v678_v10  ;;  %308 = vmatpush.bf16.msra.mxu1 %v686_v11  ;;  %v692_v9 = vld [vmem:[#allocation7 + $0x20] sm:$0xff]  ;;  %v691_v10 = vld [vmem:[#allocation7 + $0x18] sm:$0xff]  ;;  %v690_v11 = vld [vmem:[#allocation7 + $0x10] sm:$0xff] }
  0x1f   :  { %126 = vadd.xlane.f32.xlu1 %v123_v6  ;;  %98 = vadd.xlane.f32.xlu0 %v95_v7 }
  0x20   :  { %295 = vmatpush.bf16.msra.mxu0 %v677_v12  ;;  %309 = vmatpush.bf16.msra.mxu1 %v685_v13  ;;  %v689_v12 = vld [vmem:[#allocation7 + $0x8] sm:$0xff]  ;;  %v688_v13 = vld [vmem:[#allocation7] sm:$0xff] }
  0x21   :  { %406 = vmatpush.bf16.msra.mxu2 %v694_v29 }
  0x24   :  { %296 = vmatpush.bf16.msra.mxu0 %v676_v14  ;;  %310 = vmatpush.bf16.msra.mxu1 %v684_v15 }
  0x25   :  { %407 = vmatpush.bf16.msra.mxu2 %v693_v32 }
  0x28   :  { %297 = vmatpush.bf16.msra.mxu0 %v675_v16  ;;  %311 = vmatpush.bf16.msra.mxu1 %v683_v17 }
  0x29   :  { %408 = vmatpush.bf16.msra.mxu2 %v692_v9 }
  0x2c   :  { %298 = vmatpush.bf16.msra.mxu0 %v674_v18  ;;  %312 = vmatpush.bf16.msra.mxu1 %v682_v19 }
  0x2d   :  { %409 = vmatpush.bf16.msra.mxu2 %v691_v10 }
  0x30   :  { %299 = vmatpush.bf16.msra.mxu0 %v673_v20  ;;  %313 = vmatpush.bf16.msra.mxu1 %v681_v21 }
  0x31   :  { %410 = vmatpush.bf16.msra.mxu2 %v690_v11 }
  0x34   :  { %300 = vmatpush.bf16.msra.mxu0 %v672_v22  ;;  %314 = vmatpush.bf16.msra.mxu1 %v680_v23 }
  0x35   :  { %411 = vmatpush.bf16.msra.mxu2 %v689_v12 }
  0x39   :  { %412 = vmatpush.bf16.msra.mxu2 %v688_v13 }
  0x8a   :  { %v125_v24 = vpop.xlane.xlu1 %124  ;;  %v97_v25 = vpop.xlane.xlu0 %96 }
  0x8b   :  { %v128_v26 = vadd.f32 1e-12, %v125_v24  ;;  %v100_v27 = vadd.f32 1e-12, %v97_v25 }
  0x8d   :  { %716 = vrsqrt.f32 %v128_v26  ;;  %vm136_vm2 = vweird.f32 %v128_v26  ;;  %vm108_vm5 = vweird.f32 %v100_v27 }
  0x8e   :  { %718 = vrsqrt.f32 %v100_v27 }
  0x92   :  { %v127_v30 = vpop.xlane.xlu1 %126  ;;  %v99_v31 = vpop.xlane.xlu0 %98 }
  0x93   :  { %v717_v33 = vpop.eup %716  ;;  %v129_v34 = vadd.f32 1e-12, %v127_v30  ;;  %v101_v35 = vadd.f32 1e-12, %v99_v31 }
  0x94   :  { %v719_v36 = vpop.eup %718  ;;  %v131_v37 = vmul.f32 %v717_v33, %v128_v26  ;;  %vm137_vm0 = vweird.f32 %v717_v33 }
  0x95   :  { %v103_v38 = vmul.f32 %v719_v36, %v100_v27  ;;  %720 = vrsqrt.f32 %v129_v34  ;;  %vm109_vm1 = vweird.f32 %v719_v36  ;;  %vm138_vm4 = vmor %vm136_vm2, %vm137_vm0  ;;  %vm146_vm8 = vweird.f32 %v129_v34 }
  0x96   :  { %v132_v39 = vmul.f32 %v717_v33, %v131_v37  ;;  %722 = vrsqrt.f32 %v101_v35  ;;  %vm110_vm7 = vmor %vm108_vm5, %vm109_vm1  ;;  %vm118_vm10 = vweird.f32 %v101_v35  ;;  %v696_v37 = vld [vmem:[#allocation8] sm:$0xff] }
  0x97   :  { %v104_v40 = vmul.f32 %v719_v36, %v103_v38  ;;  %v421_v38 = vld [vmem:[%s951_s4] sm:$0x1]  ;;  %s860_s4 = smov [#allocation10]  }
  0x98   :  { %v133_v41 = vmul.f32 0.5, %v132_v39  ;;  %v422_v39 = vpack.c.bf16 %v421_v38, %v421_v38  ;;  %s527_s26 = sshll.u32 %s860_s4, 4  ;;  %s528_s26 = int_to_ptr.vmem [resolvable:$true] %s527_s26 }
  0x99   :  { %v105_v42 = vmul.f32 0.5, %v104_v40 }
  0x9a   :  { %v134_v45 = vsub.f32 1.5, %v133_v41  ;;  %v424_v40 = vpack.i.b16 %v422_v39, %v422_v39 }
  0x9b   :  { %v721_v43 = vpop.eup %720  ;;  %v106_v47 = vsub.f32 1.5, %v105_v42 }
  0x9c   :  { %v723_v44 = vpop.eup %722  ;;  %v141_v46 = vmul.f32 %v721_v43, %v129_v34  ;;  %v135_v52 = vmul.f32 %v717_v33, %v134_v45  ;;  %vm147_vm3 = vweird.f32 %v721_v43  ;;  %v699_v34 = vld [vmem:[#allocation8 + $0x18] sm:$0xff] }
  0x9d   :  { %v113_v48 = vmul.f32 %v723_v44, %v101_v35  ;;  %v107_v54 = vmul.f32 %v719_v36, %v106_v47  ;;  %vm119_vm6 = vweird.f32 %v723_v44  ;;  %vm148_vm9 = vmor %vm146_vm8, %vm147_vm3  ;;  %v698_v35 = vld [vmem:[#allocation8 + $0x10] sm:$0xff] }
  0x9e   :  { %v142_v49 = vmul.f32 %v721_v43, %v141_v46  ;;  %v139_v57 = vsel %vm138_vm4, %v717_v33, %v135_v52  ;;  %vm120_vm11 = vmor %vm118_vm10, %vm119_vm6  ;;  %v700_v33 = vld [vmem:[#allocation8 + $0x20] sm:$0xff] }
  0x9f   :  { %v114_v50 = vmul.f32 %v723_v44, %v113_v48  ;;  %v111_v59 = vsel %vm110_vm7, %v719_v36, %v107_v54  ;;  %v160_v63 = vmul.f32 %v139_v57, %v915_v0  ;;  %v703_v0 = vld [vmem:[#allocation8 + $0x38] sm:$0xff]  ;;  %v697_v36 = vld [vmem:[#allocation8 + $0x8] sm:$0xff]  ;;  %v715_v54 = vld [vmem:[%s953_s6] ss:$0 sm:$0xff] }
  0xa0   :  { %v143_v51 = vmul.f32 0.5, %v142_v49  ;;  %v159_v3 = vmul.f32 %v111_v59, %v917_v1  ;;  %507 = vmatpush.bf16.msra.mxu3 %v703_v0  ;;  %v323_v1 = vld [vmem:[%s949_s2] sm:$0x1] }
  0xa1   :  { %v115_v53 = vmul.f32 0.5, %v114_v50  ;;  %v324_v14 = vpack.c.bf16 %v323_v1, %v323_v1 }
  0xa2   :  { %v144_v55 = vsub.f32 1.5, %v143_v51 }
  0xa3   :  { %v116_v56 = vsub.f32 1.5, %v115_v53  ;;  %v326_v18 = vpack.i.b16 %v324_v14, %v324_v14 }
  0xa4   :  { %v145_v58 = vmul.f32 %v721_v43, %v144_v55 }
  0xa5   :  { %v117_v60 = vmul.f32 %v723_v44, %v116_v56  ;;  %v328_v20 = vperm.slane %v326_v18, 0 }
  0xa6   :  { %v149_v61 = vsel %vm148_vm9, %v721_v43, %v145_v58  ;;  %v426_v43 = vperm.slane %v424_v40, 0 }
  0xa7   :  { %v121_v62 = vsel %vm120_vm11, %v723_v44, %v117_v60  ;;  %v162_v2 = vmul.f32 %v149_v61, %v923_v4  ;;  %v702_v4 = vld [vmem:[#allocation8 + $0x30] sm:$0xff]  ;;  %v331_v24 = vunpack.c.l.bf16 %v328_v20 }
  0xa8   :  { %v161_v6 = vmul.f32 %v121_v62, %v925_v5  ;;  %508 = vmatpush.bf16.msra.mxu3 %v702_v4  ;;  %v701_v5 = vld [vmem:[#allocation8 + $0x28] sm:$0xff]  ;;  %v429_v45 = vunpack.c.l.bf16 %v426_v43 }
  0xa9   :  { %v164_v7 = vpack.c.bf16 %v162_v2, %v160_v63 }
  0xaa   :  { %v163_v8 = vpack.c.bf16 %v161_v6, %v159_v3 }
  0xab   :  { %315 = vmatmul.bf16.vlgmr.msra.gmra.mxu1 %v164_v7 }
  0xac   :  { %301 = vmatmul.bf16.vlgmr.msra.gmra.mxu0 %v163_v8  ;;  %509 = vmatpush.bf16.msra.mxu3 %v701_v5 }
  0xb0   :  { %510 = vmatpush.bf16.msra.mxu3 %v700_v33 }
  0xb4   :  { %511 = vmatpush.bf16.msra.mxu3 %v699_v34 }
  0xb8   :  { %512 = vmatpush.bf16.msra.mxu3 %v698_v35 }
  0xbc   :  { %513 = vmatpush.bf16.msra.mxu3 %v697_v36 }
  0xc0   :  { %514 = vmatpush.bf16.msra.mxu3 %v696_v37 }
 0x128   :  { %v316_v15 = vpop.f32.mrf.mxu1 }
 0x129   :  { %v302_v16 = vpop.f32.mrf.mxu0 }
 0x12a   :  { %v317_v17 = vadd.f32 %v316_v15, %v302_v16 }
 0x12c   :  { %v321_v19 = vpack.c.bf16 %v317_v17, %v317_v17 }
 0x12e   :  { %v329_v23 = vunpack.c.l.bf16 %v321_v19 }
 0x130   :  { %v318_v21 = vpop.f32.mrf.mxu1  ;;  %v332_v27 = vadd.f32 %v331_v24, %v329_v23 }
 0x131   :  { %v304_v22 = vpop.f32.mrf.mxu0 }
 0x132   :  { %v319_v25 = vadd.f32 %v318_v21, %v304_v22  ;;  %v338_v30 = vmax.f32 %v332_v27, 0.0 }
 0x134   :  { %v322_v26 = vpack.c.bf16 %v319_v25, %v319_v25 }
 0x136   :  { %v330_v28 = vunpack.c.l.bf16 %v322_v26 }
 0x138   :  { %v333_v29 = vadd.f32 %v331_v24, %v330_v28 }
 0x13a   :  { %v339_v31 = vmax.f32 %v333_v29, 0.0 }
 0x13c   :  { %v340_v32 = vpack.c.bf16 %v339_v31, %v338_v30 }
 0x13e   :  { %413 = vmatmul.bf16.vlgmr.msra.gmra.mxu2 %v340_v32 }
 0x1c1   :  { %v414_v41 = vpop.f32.mrf.mxu2 }
 0x1c2   :  { %v419_v42 = vpack.c.bf16 %v414_v41, %v414_v41 }
 0x1c4   :  { %v427_v44 = vunpack.c.l.bf16 %v419_v42 }
 0x1c6   :  { %v430_v48 = vadd.f32 %v429_v45, %v427_v44 }
 0x1c8   :  { %v436_v52 = vmax.f32 %v430_v48, 0.0 }
 0x1c9   :  { %v416_v46 = vpop.f32.mrf.mxu2 }
 0x1ca   :  { %v420_v47 = vpack.c.bf16 %v416_v46, %v416_v46 }
 0x1cc   :  { %v428_v49 = vunpack.c.l.bf16 %v420_v47 }
 0x1ce   :  { %v431_v50 = vadd.f32 %v429_v45, %v428_v49 }
 0x1d0   :  { %v437_v51 = vmax.f32 %v431_v50, 0.0 }
 0x1d2   :  { %v438_v53 = vpack.c.bf16 %v437_v51, %v436_v52 }
 0x1d4   :  { %515 = vmatmul.bf16.vlgmr.msra.gmra.mxu3 %v438_v53 }
 0x257   :  { %v516_v55 = vpop.f32.mrf.mxu3 }
 0x258   :  { %v517_v56 = vadd.f32 %v715_v54, %v516_v55 }
 0x25a   :  { %521 = vst [vmem:[#allocation10] sm:$0xff] %v517_v56 }
 0x25f   :  { %v518_v57 = vpop.f32.mrf.mxu3 }
 0x260   :  { %v519_v58 = vadd.f32 %v715_v54, %v518_v57 }
 0x262   :  { %522 = vst [vmem:[#allocation10 + $0x8] sm:$0xff] %v519_v58 }
 0x263   :  { %535 = dma.vmem_to_hbm [thread:$0]  %s528_s26, 256, %s530_s29, [#allocation4], %s861_s30, %s861_s30, %s862_s8  }
 0x264   :  { %850 = dma.done.wait [#allocation4], 256  }
 0x265   :  { %851 = vsyncadd [#allocation4], 4294967040 }
 0x266   :  { %540 = vsyncpa [#allocation3], 1 }
 0x267   :  { %541 = vsyncpa [#allocation6], 1 }
 0x268   :  { %542 = vsyncpa [#allocation9], 1 }
 0x269   :  { %543 = vsyncpa [#allocation4], 1 }

</bundles_post_ra>
